<compile_context>
chip_gen: v6e
topology: v6e:2x2x1
jax: 0.10.0
libtpu: 0.0.40
codegen_flags: <defaults>
</compile_context>

<pallas_src>
import functools

import jax
import jax.numpy as jnp
import numpy as np
from jax.experimental import pallas as pl
from jax.experimental.pallas import tpu as pltpu


def _round_up(x: int, m: int) -> int:
    return ((x + m - 1) // m) * m


def _cdiv(a: int, b: int) -> int:
    return (a + b - 1) // b


def _vn_bilinear_kernel(lab_ref, xT_ref, wT_ref, o_ref):
    # lab_ref: (C2,   TB)   labels^T tile: one column per batch element
    # xT_ref:  (3*C1, TB)   x^T tile: row (v*C1 + i) holds x[:, i, v]
    # wT_ref:  (C1*O, C2)   resident reshaped weight: wT[i*O + o, j] = W[o, i, j]
    # o_ref:   (3*O,  TB)   output^T tile: row (v*O + o) holds out[:, o, v]
    C1O = wT_ref.shape[0]
    O = o_ref.shape[0] // 3
    C1 = C1O // O

    # Stage 1 (MXU, ONCE per batch column — not per vector component):
    #   m[i*O + o, r] = sum_j W[o, i, j] * labels[r, j]
    m = jnp.dot(wT_ref[...], lab_ref[...],
                preferred_element_type=jnp.float32)           # (C1*O, TB) f32

    # Stage 2 (VPU, f32 math even when operands are bf16 — required on v5e):
    #   out_T[v*O + o, r] = sum_i x[r, i, v] * m[i*O + o, r]
    xT = xT_ref[...].astype(jnp.float32)                      # (3*C1, TB)
    for v in range(3):
        acc = xT[v * C1:v * C1 + 1, :] * m[0:O, :]            # sublane bcast * aligned slice
        for i in range(1, C1):
            acc = acc + xT[v * C1 + i:v * C1 + i + 1, :] * m[i * O:(i + 1) * O, :]
        o_ref[v * O:(v + 1) * O, :] = acc.astype(o_ref.dtype)
    # TODO(synk): for very large C1 (>~64) replace the static unroll with a
    # lax.fori_loop / C1 grid-accumulation axis to bound vreg live ranges.


def _choose_tile(rows: int, c1o: int, tile_lanes: int):
    """Pick the lane-tile (TB) and padded row count for the batch/lane axis."""
    LANE = 128
    if rows <= LANE:
        return rows, rows                       # single full-extent tile, no padding
    # Cap TB so the f32 m intermediate (C1*O x TB) stays <= ~8 MiB (v7x-safe).
    m_budget = 8 * 1024 * 1024
    cap = max(LANE, (m_budget // (c1o * 4)) // LANE * LANE)
    tgt = max(LANE, min(tile_lanes, cap))
    # Balanced tiles, >= 2 grid steps so v7x's two TensorCores both get work.
    n_tiles = max(2, _cdiv(rows, tgt))
    tb = _round_up(_cdiv(rows, n_tiles), LANE)
    rows_p = _round_up(rows, tb)
    return tb, rows_p


@functools.partial(jax.jit, static_argnames=("tile_lanes",))
def vn_bilinear(x, labels, weight, *, tile_lanes: int = 512):
    """x: [B, C1, 3], labels: [B, 1, C2], weight: [O, C1, C2] -> [B, O, 3]."""
    B, C1, V = x.shape
    O, _, C2 = weight.shape
    assert V == 3
    assert labels.shape == (B, 1, C2)

    out_dtype = x.dtype
    # DMA/MXU operand dtype follows the model dtype (bf16 models get the bf16
    # path; f32 accumulation is kept in-kernel either way).
    op_dtype = jnp.dtype(x.dtype)

    # ---- wrapper-side layout plumbing (cheap XLA ops, outside the kernel) ----
    # labels de-duplicated to one row per batch element (torch does .float()).
    lab_t = labels.reshape(B, C2).astype(jnp.float32).astype(op_dtype).T      # (C2, B)
    # x transposed so batch is the lane axis; row (v*C1 + i) holds x[:, i, v].
    x_t = jnp.transpose(x, (2, 1, 0)).reshape(3 * C1, B).astype(op_dtype)     # (3*C1, B)
    # wT[i*O + o, j] = W[o, i, j]
    w_t = jnp.transpose(weight, (1, 0, 2)).reshape(C1 * O, C2).astype(op_dtype)

    TB, rows_p = _choose_tile(B, C1 * O, tile_lanes)
    if rows_p != B:
        pad = rows_p - B
        lab_t = jnp.pad(lab_t, ((0, 0), (0, pad)))
        x_t = jnp.pad(x_t, ((0, 0), (0, pad)))
    grid = rows_p // TB

    out_t = pl.pallas_call(
        _vn_bilinear_kernel,
        out_shape=jax.ShapeDtypeStruct((3 * O, rows_p), out_dtype),
        grid_spec=pltpu.PrefetchScalarGridSpec(
            num_scalar_prefetch=0,
            grid=(grid,),
            in_specs=[
                pl.BlockSpec((C2, TB), lambda m: (0, m)),        # labels^T tile
                pl.BlockSpec((3 * C1, TB), lambda m: (0, m)),    # x^T tile
                pl.BlockSpec((C1 * O, C2), lambda m: (0, 0)),    # resident weight
            ],
            out_specs=pl.BlockSpec((3 * O, TB), lambda m: (0, m)),  # lane-dense out
        ),
        compiler_params=pltpu.CompilerParams(
            # independent batch tiles -> shard across TensorCores (v7x megacore)
            dimension_semantics=("parallel",),
        ),
    )(lab_t, x_t, w_t)

    # Restore the module's [B, O, 3] layout outside the kernel (already in the
    # model dtype — no extra cast pass).
    out = out_t[:, :B].T.reshape(B, 3, O)                     # out[b, v, o]
    return jnp.swapaxes(out, 1, 2)                            # [B, O, 3]


def vn_bilinear_ref(x, labels, weight):
    # Pure-JAX reference of the exact torch forward:
    # labels.repeat(1, 3, 1).float(); F.bilinear(x.transpose(1,-1), labels); transpose back.
    lab_rep = jnp.tile(labels.astype(jnp.float32), (1, x.shape[2], 1))   # [B, 3, C2]
    x_t = jnp.swapaxes(x, 1, -1)                                         # [B, 3, C1]
    y = jnp.einsum("bvi,oij,bvj->bvo", x_t, weight, lab_rep)             # [B, 3, O]
    return jnp.swapaxes(y, 1, -1)                                        # [B, O, 3]


if __name__ == "__main__":
    in_channels1 = 8     # C1 (N_feat)
    in_channels2 = 16    # C2 (label / class dim)
    out_channels = 32    # O

    key = jax.random.PRNGKey(0)
    kx, kl, kw = jax.random.split(key, 3)

    # nn.Bilinear default init: U(-1/sqrt(in1), 1/sqrt(in1)), deterministic here.
    bound = 1.0 / np.sqrt(in_channels1)
    weight = jax.random.uniform(
        kw, (out_channels, in_channels1, in_channels2),
        minval=-bound, maxval=bound, dtype=jnp.float32)

    # Small shape (single lane-tile path).
    B = 2
    x = jax.random.normal(kx, (B, in_channels1, 3), dtype=jnp.float32)
    labels = jax.random.uniform(kl, (B, 1, in_channels2), dtype=jnp.float32)
    out = jax.block_until_ready(vn_bilinear(x, labels, weight))
    ref = vn_bilinear_ref(x, labels, weight)
    np.testing.assert_allclose(np.asarray(out), np.asarray(ref), rtol=1e-4, atol=1e-4)

    # Larger batch (multi-tile + lane-padding path).
    B2 = 200
    kx2, kl2 = jax.random.split(jax.random.PRNGKey(1))
    x2 = jax.random.normal(kx2, (B2, in_channels1, 3), dtype=jnp.float32)
    labels2 = jax.random.uniform(kl2, (B2, 1, in_channels2), dtype=jnp.float32)
    out2 = jax.block_until_ready(vn_bilinear(x2, labels2, weight))
    ref2 = vn_bilinear_ref(x2, labels2, weight)
    np.testing.assert_allclose(np.asarray(out2), np.asarray(ref2), rtol=1e-4, atol=1e-4)

    print("KERNEL_OK")
</pallas_src>

<mosaic_0001>
module attributes {stable_mosaic.version = 11 : i64} {
  func.func @_vn_bilinear_kernel(%arg0: i32, %arg1: memref<16x2xf32, #tpu.memory_space<vmem>>, %arg2: memref<24x2xf32, #tpu.memory_space<vmem>>, %arg3: memref<256x16xf32, #tpu.memory_space<vmem>>, %arg4: memref<96x2xf32, #tpu.memory_space<vmem>>) attributes {dimension_semantics = [#tpu.dimension_semantics<parallel>], iteration_bounds = array<i64: 1>, scalar_prefetch = 0 : i64, scratch_operands = 0 : i64, tpu.core_type = #tpu.core_type<tc>, window_params = [{transform_indices = @transform_0, window_bounds = array<i64: 16, 2>}, {transform_indices = @transform_1, window_bounds = array<i64: 24, 2>}, {pipeline_mode = #tpu.pipeline_mode<synchronous>, transform_indices = @transform_2, window_bounds = array<i64: 256, 16>}, {transform_indices = @transform_3, window_bounds = array<i64: 96, 2>}]} {
    %c0 = arith.constant 0 : index
    %c0_0 = arith.constant 0 : index
    %0 = vector.load %arg3[%c0, %c0_0] : memref<256x16xf32, #tpu.memory_space<vmem>>, vector<256x16xf32>
    %c0_1 = arith.constant 0 : index
    %c0_2 = arith.constant 0 : index
    %1 = vector.load %arg1[%c0_1, %c0_2] : memref<16x2xf32, #tpu.memory_space<vmem>>, vector<16x2xf32>
    %cst = arith.constant dense<0.000000e+00> : vector<256x2xf32>
    %2 = tpu.matmul %0, %1, %cst {dimension_numbers = #tpu.dot_dimension_numbers<[1], [0], [0], [1], [0, 0, 1, 1], [], []>} : vector<256x16xf32>, vector<16x2xf32>, vector<256x2xf32> -> vector<256x2xf32>
    %c0_3 = arith.constant 0 : index
    %c0_4 = arith.constant 0 : index
    %3 = vector.load %arg2[%c0_3, %c0_4] : memref<24x2xf32, #tpu.memory_space<vmem>>, vector<24x2xf32>
    %4 = vector.extract_strided_slice %3 {offsets = [0, 0], sizes = [1, 2], strides = [1, 1]} : vector<24x2xf32> to vector<1x2xf32>
    %5 = vector.extract_strided_slice %2 {offsets = [0, 0], sizes = [32, 2], strides = [1, 1]} : vector<256x2xf32> to vector<32x2xf32>
    %6 = vector.broadcast %4 : vector<1x2xf32> to vector<32x2xf32>
    %7 = arith.mulf %6, %5 : vector<32x2xf32>
    %8 = vector.extract_strided_slice %3 {offsets = [1, 0], sizes = [1, 2], strides = [1, 1]} : vector<24x2xf32> to vector<1x2xf32>
    %9 = vector.extract_strided_slice %2 {offsets = [32, 0], sizes = [32, 2], strides = [1, 1]} : vector<256x2xf32> to vector<32x2xf32>
    %10 = vector.broadcast %8 : vector<1x2xf32> to vector<32x2xf32>
    %11 = arith.mulf %10, %9 : vector<32x2xf32>
    %12 = arith.addf %7, %11 : vector<32x2xf32>
    %13 = vector.extract_strided_slice %3 {offsets = [2, 0], sizes = [1, 2], strides = [1, 1]} : vector<24x2xf32> to vector<1x2xf32>
    %14 = vector.extract_strided_slice %2 {offsets = [64, 0], sizes = [32, 2], strides = [1, 1]} : vector<256x2xf32> to vector<32x2xf32>
    %15 = vector.broadcast %13 : vector<1x2xf32> to vector<32x2xf32>
    %16 = arith.mulf %15, %14 : vector<32x2xf32>
    %17 = arith.addf %12, %16 : vector<32x2xf32>
    %18 = vector.extract_strided_slice %3 {offsets = [3, 0], sizes = [1, 2], strides = [1, 1]} : vector<24x2xf32> to vector<1x2xf32>
    %19 = vector.extract_strided_slice %2 {offsets = [96, 0], sizes = [32, 2], strides = [1, 1]} : vector<256x2xf32> to vector<32x2xf32>
    %20 = vector.broadcast %18 : vector<1x2xf32> to vector<32x2xf32>
    %21 = arith.mulf %20, %19 : vector<32x2xf32>
    %22 = arith.addf %17, %21 : vector<32x2xf32>
    %23 = vector.extract_strided_slice %3 {offsets = [4, 0], sizes = [1, 2], strides = [1, 1]} : vector<24x2xf32> to vector<1x2xf32>
    %24 = vector.extract_strided_slice %2 {offsets = [128, 0], sizes = [32, 2], strides = [1, 1]} : vector<256x2xf32> to vector<32x2xf32>
    %25 = vector.broadcast %23 : vector<1x2xf32> to vector<32x2xf32>
    %26 = arith.mulf %25, %24 : vector<32x2xf32>
    %27 = arith.addf %22, %26 : vector<32x2xf32>
    %28 = vector.extract_strided_slice %3 {offsets = [5, 0], sizes = [1, 2], strides = [1, 1]} : vector<24x2xf32> to vector<1x2xf32>
    %29 = vector.extract_strided_slice %2 {offsets = [160, 0], sizes = [32, 2], strides = [1, 1]} : vector<256x2xf32> to vector<32x2xf32>
    %30 = vector.broadcast %28 : vector<1x2xf32> to vector<32x2xf32>
    %31 = arith.mulf %30, %29 : vector<32x2xf32>
    %32 = arith.addf %27, %31 : vector<32x2xf32>
    %33 = vector.extract_strided_slice %3 {offsets = [6, 0], sizes = [1, 2], strides = [1, 1]} : vector<24x2xf32> to vector<1x2xf32>
    %34 = vector.extract_strided_slice %2 {offsets = [192, 0], sizes = [32, 2], strides = [1, 1]} : vector<256x2xf32> to vector<32x2xf32>
    %35 = vector.broadcast %33 : vector<1x2xf32> to vector<32x2xf32>
    %36 = arith.mulf %35, %34 : vector<32x2xf32>
    %37 = arith.addf %32, %36 : vector<32x2xf32>
    %38 = vector.extract_strided_slice %3 {offsets = [7, 0], sizes = [1, 2], strides = [1, 1]} : vector<24x2xf32> to vector<1x2xf32>
    %39 = vector.extract_strided_slice %2 {offsets = [224, 0], sizes = [32, 2], strides = [1, 1]} : vector<256x2xf32> to vector<32x2xf32>
    %40 = vector.broadcast %38 : vector<1x2xf32> to vector<32x2xf32>
    %41 = arith.mulf %40, %39 : vector<32x2xf32>
    %42 = arith.addf %37, %41 : vector<32x2xf32>
    %c0_5 = arith.constant 0 : index
    %c0_6 = arith.constant 0 : index
    %43 = vector.load %arg4[%c0_5, %c0_6] : memref<96x2xf32, #tpu.memory_space<vmem>>, vector<32x2xf32>
    tpu.vector_store %arg4[%c0_5, %c0_6], %42 {strides = array<i32>} : memref<96x2xf32, #tpu.memory_space<vmem>>, vector<32x2xf32>,
    %44 = vector.extract_strided_slice %3 {offsets = [8, 0], sizes = [1, 2], strides = [1, 1]} : vector<24x2xf32> to vector<1x2xf32>
    %45 = vector.extract_strided_slice %2 {offsets = [0, 0], sizes = [32, 2], strides = [1, 1]} : vector<256x2xf32> to vector<32x2xf32>
    %46 = vector.broadcast %44 : vector<1x2xf32> to vector<32x2xf32>
    %47 = arith.mulf %46, %45 : vector<32x2xf32>
    %48 = vector.extract_strided_slice %3 {offsets = [9, 0], sizes = [1, 2], strides = [1, 1]} : vector<24x2xf32> to vector<1x2xf32>
    %49 = vector.extract_strided_slice %2 {offsets = [32, 0], sizes = [32, 2], strides = [1, 1]} : vector<256x2xf32> to vector<32x2xf32>
    %50 = vector.broadcast %48 : vector<1x2xf32> to vector<32x2xf32>
    %51 = arith.mulf %50, %49 : vector<32x2xf32>
    %52 = arith.addf %47, %51 : vector<32x2xf32>
    %53 = vector.extract_strided_slice %3 {offsets = [10, 0], sizes = [1, 2], strides = [1, 1]} : vector<24x2xf32> to vector<1x2xf32>
    %54 = vector.extract_strided_slice %2 {offsets = [64, 0], sizes = [32, 2], strides = [1, 1]} : vector<256x2xf32> to vector<32x2xf32>
    %55 = vector.broadcast %53 : vector<1x2xf32> to vector<32x2xf32>
    %56 = arith.mulf %55, %54 : vector<32x2xf32>
    %57 = arith.addf %52, %56 : vector<32x2xf32>
    %58 = vector.extract_strided_slice %3 {offsets = [11, 0], sizes = [1, 2], strides = [1, 1]} : vector<24x2xf32> to vector<1x2xf32>
    %59 = vector.extract_strided_slice %2 {offsets = [96, 0], sizes = [32, 2], strides = [1, 1]} : vector<256x2xf32> to vector<32x2xf32>
    %60 = vector.broadcast %58 : vector<1x2xf32> to vector<32x2xf32>
    %61 = arith.mulf %60, %59 : vector<32x2xf32>
    %62 = arith.addf %57, %61 : vector<32x2xf32>
    %63 = vector.extract_strided_slice %3 {offsets = [12, 0], sizes = [1, 2], strides = [1, 1]} : vector<24x2xf32> to vector<1x2xf32>
    %64 = vector.extract_strided_slice %2 {offsets = [128, 0], sizes = [32, 2], strides = [1, 1]} : vector<256x2xf32> to vector<32x2xf32>
    %65 = vector.broadcast %63 : vector<1x2xf32> to vector<32x2xf32>
    %66 = arith.mulf %65, %64 : vector<32x2xf32>
    %67 = arith.addf %62, %66 : vector<32x2xf32>
    %68 = vector.extract_strided_slice %3 {offsets = [13, 0], sizes = [1, 2], strides = [1, 1]} : vector<24x2xf32> to vector<1x2xf32>
    %69 = vector.extract_strided_slice %2 {offsets = [160, 0], sizes = [32, 2], strides = [1, 1]} : vector<256x2xf32> to vector<32x2xf32>
    %70 = vector.broadcast %68 : vector<1x2xf32> to vector<32x2xf32>
    %71 = arith.mulf %70, %69 : vector<32x2xf32>
    %72 = arith.addf %67, %71 : vector<32x2xf32>
    %73 = vector.extract_strided_slice %3 {offsets = [14, 0], sizes = [1, 2], strides = [1, 1]} : vector<24x2xf32> to vector<1x2xf32>
    %74 = vector.extract_strided_slice %2 {offsets = [192, 0], sizes = [32, 2], strides = [1, 1]} : vector<256x2xf32> to vector<32x2xf32>
    %75 = vector.broadcast %73 : vector<1x2xf32> to vector<32x2xf32>
    %76 = arith.mulf %75, %74 : vector<32x2xf32>
    %77 = arith.addf %72, %76 : vector<32x2xf32>
    %78 = vector.extract_strided_slice %3 {offsets = [15, 0], sizes = [1, 2], strides = [1, 1]} : vector<24x2xf32> to vector<1x2xf32>
    %79 = vector.extract_strided_slice %2 {offsets = [224, 0], sizes = [32, 2], strides = [1, 1]} : vector<256x2xf32> to vector<32x2xf32>
    %80 = vector.broadcast %78 : vector<1x2xf32> to vector<32x2xf32>
    %81 = arith.mulf %80, %79 : vector<32x2xf32>
    %82 = arith.addf %77, %81 : vector<32x2xf32>
    %c32 = arith.constant 32 : index
    %c0_7 = arith.constant 0 : index
    %83 = vector.load %arg4[%c32, %c0_7] : memref<96x2xf32, #tpu.memory_space<vmem>>, vector<32x2xf32>
    tpu.vector_store %arg4[%c32, %c0_7], %82 {strides = array<i32>} : memref<96x2xf32, #tpu.memory_space<vmem>>, vector<32x2xf32>,
    %84 = vector.extract_strided_slice %3 {offsets = [16, 0], sizes = [1, 2], strides = [1, 1]} : vector<24x2xf32> to vector<1x2xf32>
    %85 = vector.extract_strided_slice %2 {offsets = [0, 0], sizes = [32, 2], strides = [1, 1]} : vector<256x2xf32> to vector<32x2xf32>
    %86 = vector.broadcast %84 : vector<1x2xf32> to vector<32x2xf32>
    %87 = arith.mulf %86, %85 : vector<32x2xf32>
    %88 = vector.extract_strided_slice %3 {offsets = [17, 0], sizes = [1, 2], strides = [1, 1]} : vector<24x2xf32> to vector<1x2xf32>
    %89 = vector.extract_strided_slice %2 {offsets = [32, 0], sizes = [32, 2], strides = [1, 1]} : vector<256x2xf32> to vector<32x2xf32>
    %90 = vector.broadcast %88 : vector<1x2xf32> to vector<32x2xf32>
    %91 = arith.mulf %90, %89 : vector<32x2xf32>
    %92 = arith.addf %87, %91 : vector<32x2xf32>
    %93 = vector.extract_strided_slice %3 {offsets = [18, 0], sizes = [1, 2], strides = [1, 1]} : vector<24x2xf32> to vector<1x2xf32>
    %94 = vector.extract_strided_slice %2 {offsets = [64, 0], sizes = [32, 2], strides = [1, 1]} : vector<256x2xf32> to vector<32x2xf32>
    %95 = vector.broadcast %93 : vector<1x2xf32> to vector<32x2xf32>
    %96 = arith.mulf %95, %94 : vector<32x2xf32>
    %97 = arith.addf %92, %96 : vector<32x2xf32>
    %98 = vector.extract_strided_slice %3 {offsets = [19, 0], sizes = [1, 2], strides = [1, 1]} : vector<24x2xf32> to vector<1x2xf32>
    %99 = vector.extract_strided_slice %2 {offsets = [96, 0], sizes = [32, 2], strides = [1, 1]} : vector<256x2xf32> to vector<32x2xf32>
    %100 = vector.broadcast %98 : vector<1x2xf32> to vector<32x2xf32>
    %101 = arith.mulf %100, %99 : vector<32x2xf32>
    %102 = arith.addf %97, %101 : vector<32x2xf32>
    %103 = vector.extract_strided_slice %3 {offsets = [20, 0], sizes = [1, 2], strides = [1, 1]} : vector<24x2xf32> to vector<1x2xf32>
    %104 = vector.extract_strided_slice %2 {offsets = [128, 0], sizes = [32, 2], strides = [1, 1]} : vector<256x2xf32> to vector<32x2xf32>
    %105 = vector.broadcast %103 : vector<1x2xf32> to vector<32x2xf32>
    %106 = arith.mulf %105, %104 : vector<32x2xf32>
    %107 = arith.addf %102, %106 : vector<32x2xf32>
    %108 = vector.extract_strided_slice %3 {offsets = [21, 0], sizes = [1, 2], strides = [1, 1]} : vector<24x2xf32> to vector<1x2xf32>
    %109 = vector.extract_strided_slice %2 {offsets = [160, 0], sizes = [32, 2], strides = [1, 1]} : vector<256x2xf32> to vector<32x2xf32>
    %110 = vector.broadcast %108 : vector<1x2xf32> to vector<32x2xf32>
    %111 = arith.mulf %110, %109 : vector<32x2xf32>
    %112 = arith.addf %107, %111 : vector<32x2xf32>
    %113 = vector.extract_strided_slice %3 {offsets = [22, 0], sizes = [1, 2], strides = [1, 1]} : vector<24x2xf32> to vector<1x2xf32>
    %114 = vector.extract_strided_slice %2 {offsets = [192, 0], sizes = [32, 2], strides = [1, 1]} : vector<256x2xf32> to vector<32x2xf32>
    %115 = vector.broadcast %113 : vector<1x2xf32> to vector<32x2xf32>
    %116 = arith.mulf %115, %114 : vector<32x2xf32>
    %117 = arith.addf %112, %116 : vector<32x2xf32>
    %118 = vector.extract_strided_slice %3 {offsets = [23, 0], sizes = [1, 2], strides = [1, 1]} : vector<24x2xf32> to vector<1x2xf32>
    %119 = vector.extract_strided_slice %2 {offsets = [224, 0], sizes = [32, 2], strides = [1, 1]} : vector<256x2xf32> to vector<32x2xf32>
    %120 = vector.broadcast %118 : vector<1x2xf32> to vector<32x2xf32>
    %121 = arith.mulf %120, %119 : vector<32x2xf32>
    %122 = arith.addf %117, %121 : vector<32x2xf32>
    %c64 = arith.constant 64 : index
    %c0_8 = arith.constant 0 : index
    %123 = vector.load %arg4[%c64, %c0_8] : memref<96x2xf32, #tpu.memory_space<vmem>>, vector<32x2xf32>
    tpu.vector_store %arg4[%c64, %c0_8], %122 {strides = array<i32>} : memref<96x2xf32, #tpu.memory_space<vmem>>, vector<32x2xf32>,
    return
  }
  func.func @transform_0(%arg0: i32) -> (i32, i32) {
    %c0_i32 = arith.constant 0 : i32
    %c0_i32_0 = arith.constant 0 : i32
    return %c0_i32, %arg0 : i32, i32
  }
  func.func @transform_1(%arg0: i32) -> (i32, i32) {
    %c0_i32 = arith.constant 0 : i32
    %c0_i32_0 = arith.constant 0 : i32
    return %c0_i32, %arg0 : i32, i32
  }
  func.func @transform_2(%arg0: i32) -> (i32, i32) {
    %c0_i32 = arith.constant 0 : i32
    %c0_i32_0 = arith.constant 0 : i32
    %c0_i32_1 = arith.constant 0 : i32
    return %c0_i32, %c0_i32_0 : i32, i32
  }
  func.func @transform_3(%arg0: i32) -> (i32, i32) {
    %c0_i32 = arith.constant 0 : i32
    %c0_i32_0 = arith.constant 0 : i32
    return %c0_i32, %arg0 : i32, i32
  }
}

</mosaic_0001>

<bundles_post_ra>
// kernel: vn_bilinear.1
= control target key start
LH: loop header
LB: loop body
LE: loop exit
PB: predicated region body
PF: predicated region fallthrough
CT: control target
= control target key end

     0   :  { %vm48_vm0 = vcmask 130048   ;;  %v373_v34 = vlaneseq  ;;  %vm465_vm1 = vcmask 15360   ;;  %s1199_s0 = inlined_call_operand.vmem [shape: f32[16,2], index: 0, kind: input, shape index: {}]   ;;  %s1200_s2 = inlined_call_operand.vmem [shape: f32[256,16], index: 2, kind: input, shape index: {}]   ;;  %s1201_s1 = inlined_call_operand.vmem [shape: f32[24,2], index: 1, kind: input, shape index: {}]   ;;  %s1202_s3 = inlined_call_operand.vmem [shape: f32[96,2], index: 3, kind: output, shape index: {}]  }
   0x1   :  { %v47_v0 = vld [vmem:[%s1199_s0 + $0x8] sm:$0xff]  ;;  %v46_v1 = vld [vmem:[%s1199_s0] sm:$0xff]  ;;  %v16_v4 = vld [vmem:[%s1200_s2 + $0x10] sm:$0xff] }
   0x2   :  { %v14_v2 = vld [vmem:[%s1200_s2] sm:$0xff]  ;;  %732 = vmatprep.subr.mxu0 %v47_v0  ;;  %v15_v3 = vld [vmem:[%s1200_s2 + $0x8] sm:$0xff]  ;;  %784 = vmatprep.subr.mxu1 %v47_v0  ;;  %v32_v7 = vld [vmem:[%s1200_s2 + $0x90] sm:$0xff]  ;;  %v374_v35 = vshrl.u32 %v373_v34, 7 }
   0x3   :  { %736 = vmatprep.mubr.msk.f32.mxu0 %vm48_vm0, %v14_v2  ;;  %733 = vmatpush3.msra.mxu0 %v47_v0  ;;  %v30_v5 = vld [vmem:[%s1200_s2 + $0x80] sm:$0xff]  ;;  %v31_v6 = vld [vmem:[%s1200_s2 + $0x88] sm:$0xff]  ;;  %v17_v8 = vld [vmem:[%s1200_s2 + $0x18] sm:$0xff] }
   0x4   :  { %734 = vmatprep.subr.mxu0 %v46_v1  ;;  %786 = vmatpush3.msra.mxu1 %v47_v0  ;;  %v18_v9 = vld [vmem:[%s1200_s2 + $0x20] sm:$0xff]  ;;  %v33_v10 = vld [vmem:[%s1200_s2 + $0x98] sm:$0xff]  ;;  %v19_v12 = vld [vmem:[%s1200_s2 + $0x28] sm:$0xff]  ;;  %v375_v36 = vsub.s32 0, %v374_v35  ;;  %v419_v40 = vsub.s32 4, %v374_v35  ;;  %v383_v41 = vsub.s32 1, %v374_v35 }
   0x5   :  { %735 = vmatpush3.msra.mxu0 %v46_v1  ;;  %785 = vmatprep.subr.mxu1 %v46_v1  ;;  %v34_v11 = vld [vmem:[%s1200_s2 + $0xa0] sm:$0xff]  ;;  %v20_v13 = vld [vmem:[%s1200_s2 + $0x30] sm:$0xff]  ;;  %v35_v14 = vld [vmem:[%s1200_s2 + $0xa8] sm:$0xff]  ;;  %v431_v42 = vsub.s32 5, %v374_v35  ;;  %v395_v43 = vsub.s32 2, %v374_v35  ;;  %v443_v47 = vsub.s32 6, %v374_v35 }
   0x6   :  { %737 = vmatmul.mubr.msk.f32.vlgmr.msra.gmra.mxu0 %vm48_vm0, %v15_v3  ;;  %787 = vmatpush3.msra.mxu1 %v46_v1  ;;  %v36_v15 = vld [vmem:[%s1200_s2 + $0xb0] sm:$0xff]  ;;  %v21_v16 = vld [vmem:[%s1200_s2 + $0x38] sm:$0xff]  ;;  %v22_v17 = vld [vmem:[%s1200_s2 + $0x40] sm:$0xff]  ;;  %v407_v51 = vsub.s32 3, %v374_v35  ;;  %v455_v56 = vsub.s32 7, %v374_v35 }
   0x7   :  { %739 = vmatprep.mubr.msk.f32.mxu0 %vm48_vm0, %v16_v4  ;;  %760 = vmatprep.mubr.msk.f32.mxu1 %vm48_vm0, %v30_v5  ;;  %v37_v18 = vld [vmem:[%s1200_s2 + $0xb8] sm:$0xff]  ;;  %v38_v19 = vld [vmem:[%s1200_s2 + $0xc0] sm:$0xff]  ;;  %v23_v20 = vld [vmem:[%s1200_s2 + $0x48] sm:$0xff] }
   0x8   :  { %761 = vmatmul.mubr.msk.f32.vlgmr.msra.gmra.mxu1 %vm48_vm0, %v31_v6  ;;  %v24_v21 = vld [vmem:[%s1200_s2 + $0x50] sm:$0xff]  ;;  %v39_v22 = vld [vmem:[%s1200_s2 + $0xc8] sm:$0xff]  ;;  %v25_v24 = vld [vmem:[%s1200_s2 + $0x58] sm:$0xff] }
   0x9   :  { %763 = vmatprep.mubr.msk.f32.mxu1 %vm48_vm0, %v32_v7  ;;  %v40_v23 = vld [vmem:[%s1200_s2 + $0xd0] sm:$0xff]  ;;  %v26_v25 = vld [vmem:[%s1200_s2 + $0x60] sm:$0xff]  ;;  %v41_v26 = vld [vmem:[%s1200_s2 + $0xd8] sm:$0xff] }
   0xa   :  { %740 = vmatmul.mubr.msk.f32.gmra.mxu0 %vm48_vm0, %v17_v8  ;;  %v42_v27 = vld [vmem:[%s1200_s2 + $0xe0] sm:$0xff]  ;;  %v27_v28 = vld [vmem:[%s1200_s2 + $0x68] sm:$0xff]  ;;  %v28_v29 = vld [vmem:[%s1200_s2 + $0x70] sm:$0xff] }
   0xb   :  { %742 = vmatprep.mubr.msk.f32.mxu0 %vm48_vm0, %v18_v9  ;;  %v43_v30 = vld [vmem:[%s1200_s2 + $0xe8] sm:$0xff]  ;;  %v44_v31 = vld [vmem:[%s1200_s2 + $0xf0] sm:$0xff]  ;;  %v29_v32 = vld [vmem:[%s1200_s2 + $0x78] sm:$0xff] }
   0xc   :  { %764 = vmatmul.mubr.msk.f32.gmra.mxu1 %vm48_vm0, %v33_v10  ;;  %v45_v33 = vld [vmem:[%s1200_s2 + $0xf8] sm:$0xff]  ;;  %v370_v37 = vld [vmem:[%s1201_s1] sm:$0xff]  ;;  %v371_v38 = vld [vmem:[%s1201_s1 + $0x8] sm:$0xff] }
   0xd   :  { %766 = vmatprep.mubr.msk.f32.mxu1 %vm48_vm0, %v34_v11  ;;  %v372_v39 = vld [vmem:[%s1201_s1 + $0x10] sm:$0xff]  ;;  %v376_v44 = vrot.slane %v370_v37, %v375_v36  ;;  %v473_v45 = vrot.slane %v371_v38, %v375_v36  ;;  %v420_v48 = vrot.slane %v370_v37, %v419_v40  ;;  %v517_v49 = vrot.slane %v371_v38, %v419_v40 }
   0xe   :  { %743 = vmatmul.mubr.msk.f32.gmra.mxu0 %vm48_vm0, %v19_v12  ;;  %v569_v46 = vrot.slane %v372_v39, %v375_v36  ;;  %v613_v50 = vrot.slane %v372_v39, %v419_v40  ;;  %v951_v53 = vrot.slane %v370_v37, %v383_v41  ;;  %v953_v54 = vrot.slane %v371_v38, %v383_v41 }
   0xf   :  { %745 = vmatprep.mubr.msk.f32.mxu0 %vm48_vm0, %v20_v13  ;;  %v955_v55 = vrot.slane %v372_v39, %v383_v41  ;;  %v957_v57 = vrot.slane %v370_v37, %v431_v42  ;;  %v959_v58 = vrot.slane %v371_v38, %v431_v42  ;;  %v961_v59 = vrot.slane %v372_v39, %v431_v42 }
  0x10   :  { %767 = vmatmul.mubr.msk.f32.gmra.mxu1 %vm48_vm0, %v35_v14  ;;  %v963_v60 = vrot.slane %v370_v37, %v395_v43  ;;  %v965_v63 = vrot.slane %v371_v38, %v395_v43  ;;  %v967_v0 = vrot.slane %v372_v39, %v395_v43  ;;  %v969_v1 = vrot.slane %v370_v37, %v443_v47 }
  0x11   :  { %769 = vmatprep.mubr.msk.f32.mxu1 %vm48_vm0, %v36_v15  ;;  %v971_v2 = vrot.slane %v371_v38, %v443_v47  ;;  %v973_v3 = vrot.slane %v372_v39, %v443_v47  ;;  %v975_v4 = vrot.slane %v370_v37, %v407_v51  ;;  %v977_v5 = vrot.slane %v371_v38, %v407_v51 }
  0x12   :  { %746 = vmatmul.mubr.msk.f32.gmra.mxu0 %vm48_vm0, %v21_v16  ;;  %v979_v6 = vrot.slane %v372_v39, %v407_v51  ;;  %v981_v10 = vrot.slane %v370_v37, %v455_v56  ;;  %v983_v11 = vrot.slane %v371_v38, %v455_v56  ;;  %v985_v12 = vrot.slane %v372_v39, %v455_v56 }
  0x13   :  { %748 = vmatprep.mubr.msk.f32.mxu0 %vm48_vm0, %v22_v17 }
  0x14   :  { %770 = vmatmul.mubr.msk.f32.gmra.mxu1 %vm48_vm0, %v37_v18 }
  0x15   :  { %772 = vmatprep.mubr.msk.f32.mxu1 %vm48_vm0, %v38_v19 }
  0x16   :  { %749 = vmatmul.mubr.msk.f32.gmra.mxu0 %vm48_vm0, %v23_v20 }
  0x17   :  { %751 = vmatprep.mubr.msk.f32.mxu0 %vm48_vm0, %v24_v21 }
  0x18   :  { %773 = vmatmul.mubr.msk.f32.gmra.mxu1 %vm48_vm0, %v39_v22 }
  0x19   :  { %775 = vmatprep.mubr.msk.f32.mxu1 %vm48_vm0, %v40_v23 }
  0x1a   :  { %752 = vmatmul.mubr.msk.f32.gmra.mxu0 %vm48_vm0, %v25_v24 }
  0x1b   :  { %754 = vmatprep.mubr.msk.f32.mxu0 %vm48_vm0, %v26_v25 }
  0x1c   :  { %776 = vmatmul.mubr.msk.f32.gmra.mxu1 %vm48_vm0, %v41_v26 }
  0x1d   :  { %778 = vmatprep.mubr.msk.f32.mxu1 %vm48_vm0, %v42_v27 }
  0x1e   :  { %755 = vmatmul.mubr.msk.f32.gmra.mxu0 %vm48_vm0, %v27_v28 }
  0x1f   :  { %757 = vmatprep.mubr.msk.f32.mxu0 %vm48_vm0, %v28_v29 }
  0x20   :  { %779 = vmatmul.mubr.msk.f32.gmra.mxu1 %vm48_vm0, %v43_v30 }
  0x21   :  { %781 = vmatprep.mubr.msk.f32.mxu1 %vm48_vm0, %v44_v31 }
  0x22   :  { %758 = vmatmul.mubr.msk.f32.gmra.mxu0 %vm48_vm0, %v29_v32 }
  0x24   :  { %782 = vmatmul.mubr.msk.f32.gmra.mxu1 %vm48_vm0, %v45_v33 }
  0xc6   :  { %v738_v52 = vpop.f32.mrf.mxu0 }
  0xc7   :  { %v378_v7 = vmul.f32 %v738_v52, %v376_v44  ;;  %v475_v13 = vmul.f32 %v738_v52, %v473_v45  ;;  %v571_v14 = vmul.f32 %v738_v52, %v569_v46 }
  0xc8   :  { %v211_v61 = vpop.f32.mrf.mxu0  ;;  %v762_v62 = vpop.f32.mrf.mxu1 }
  0xc9   :  { %v377_v15 = vmul.f32 %v376_v44, %v211_v61  ;;  %v474_v16 = vmul.f32 %v473_v45, %v211_v61  ;;  %v570_v17 = vmul.f32 %v569_v46, %v211_v61  ;;  %v987_v19 = vmul.f32 %v762_v62, %v420_v48 }
  0xca   :  { %v741_v8 = vpop.f32.mrf.mxu0  ;;  %v291_v9 = vpop.f32.mrf.mxu1  ;;  %v989_v20 = vmul.f32 %v762_v62, %v517_v49  ;;  %v991_v21 = vmul.f32 %v762_v62, %v613_v50 }
  0xcb   :  { %v380_v23 = vmul.f32 %v741_v8, %v376_v44  ;;  %v477_v24 = vmul.f32 %v741_v8, %v473_v45  ;;  %v573_v25 = vmul.f32 %v741_v8, %v569_v46  ;;  %v993_v26 = vmul.f32 %v420_v48, %v291_v9 }
  0xcc   :  { %v221_v18 = vpop.f32.mrf.mxu0  ;;  %v765_v22 = vpop.f32.mrf.mxu1  ;;  %v995_v30 = vmul.f32 %v517_v49, %v291_v9  ;;  %v997_v31 = vmul.f32 %v613_v50, %v291_v9 }
  0xcd   :  { %v379_v27 = vmul.f32 %v376_v44, %v221_v18  ;;  %v476_v28 = vmul.f32 %v473_v45, %v221_v18  ;;  %v572_v33 = vmul.f32 %v569_v46, %v221_v18  ;;  %v1002_v38 = vmul.f32 %v765_v22, %v420_v48 }
  0xce   :  { %v744_v29 = vpop.f32.mrf.mxu0  ;;  %v301_v32 = vpop.f32.mrf.mxu1  ;;  %v1004_v39 = vmul.f32 %v765_v22, %v517_v49  ;;  %v1006_v40 = vmul.f32 %v765_v22, %v613_v50 }
  0xcf   :  { %v386_v34 = vmul.f32 %v744_v29, %v951_v53  ;;  %v483_v35 = vmul.f32 %v744_v29, %v953_v54  ;;  %v579_v36 = vmul.f32 %v744_v29, %v955_v55  ;;  %v1008_v41 = vmul.f32 %v420_v48, %v301_v32 }
  0xd0   :  { %v231_v37 = vpop.f32.mrf.mxu0  ;;  %v768_v42 = vpop.f32.mrf.mxu1  ;;  %v1011_v45 = vmul.f32 %v517_v49, %v301_v32  ;;  %v1013_v46 = vmul.f32 %v613_v50, %v301_v32 }
  0xd1   :  { %v390_v43 = vadd.f32 %v386_v34, %v378_v7  ;;  %v385_v44 = vmul.f32 %v951_v53, %v231_v37  ;;  %v487_v47 = vadd.f32 %v483_v35, %v475_v13  ;;  %v583_v51 = vadd.f32 %v579_v36, %v571_v14 }
  0xd2   :  { %v482_v52 = vmul.f32 %v953_v54, %v231_v37  ;;  %v578_v56 = vmul.f32 %v955_v55, %v231_v37  ;;  %v747_v61 = vpop.f32.mrf.mxu0  ;;  %v311_v62 = vpop.f32.mrf.mxu1  ;;  %v1021_v9 = vmul.f32 %v768_v42, %v957_v57  ;;  %v1024_v14 = vmul.f32 %v768_v42, %v959_v58 }
  0xd3   :  { %v388_v8 = vmul.f32 %v747_v61, %v951_v53  ;;  %v485_v48 = vmul.f32 %v747_v61, %v953_v54  ;;  %v581_v7 = vmul.f32 %v747_v61, %v955_v55  ;;  %v389_v49 = vadd.f32 %v385_v44, %v377_v15 }
  0xd4   :  { %v486_v50 = vadd.f32 %v482_v52, %v474_v16  ;;  %v582_v18 = vadd.f32 %v578_v56, %v570_v17  ;;  %v241_v13 = vpop.f32.mrf.mxu0  ;;  %v771_v22 = vpop.f32.mrf.mxu1  ;;  %v1028_v34 = vmul.f32 %v768_v42, %v961_v59  ;;  %v1031_v35 = vmul.f32 %v957_v57, %v311_v62 }
  0xd5   :  { %v392_v29 = vadd.f32 %v388_v8, %v380_v23  ;;  %v387_v32 = vmul.f32 %v951_v53, %v241_v13  ;;  %v489_v36 = vadd.f32 %v485_v48, %v477_v24  ;;  %v585_v37 = vadd.f32 %v581_v7, %v573_v25 }
  0xd6   :  { %1203 = vst [vmem:[#allocation2_spill] sm:$0xff] %v1031_v35  ;;  %v484_v15 = vmul.f32 %v953_v54, %v241_v13  ;;  %v580_v16 = vmul.f32 %v955_v55, %v241_v13  ;;  %v750_v17 = vpop.f32.mrf.mxu0  ;;  %v321_v44 = vpop.f32.mrf.mxu1  ;;  %v1039_v42 = vmul.f32 %v959_v58, %v311_v62  ;;  %v1042_v24 = vmul.f32 %v961_v59, %v311_v62 }
  0xd7   :  { %v398_v52 = vmul.f32 %v750_v17, %v963_v60  ;;  %v495_v23 = vmul.f32 %v750_v17, %v965_v63  ;;  %v591_v53 = vmul.f32 %v750_v17, %v967_v0  ;;  %v391_v56 = vadd.f32 %v387_v32, %v379_v27 }
  0xd8   :  { %v488_v61 = vadd.f32 %v484_v15, %v476_v28  ;;  %v584_v8 = vadd.f32 %v580_v16, %v572_v33  ;;  %1204 = vst [vmem:[#allocation3_spill] sm:$0xff] %v1042_v24  ;;  %v251_v54 = vpop.f32.mrf.mxu0  ;;  %v774_v25 = vpop.f32.mrf.mxu1  ;;  %v1046_v7 = vmul.f32 %v771_v22, %v957_v57  ;;  %v1049_v13 = vmul.f32 %v771_v22, %v959_v58 }
  0xd9   :  { %v402_v55 = vadd.f32 %v398_v52, %v390_v43  ;;  %v397_v48 = vmul.f32 %v963_v60, %v251_v54  ;;  %v499_v17 = vadd.f32 %v495_v23, %v487_v47  ;;  %v595_v35 = vadd.f32 %v591_v53, %v583_v51 }
  0xda   :  { %1205 = vst [vmem:[#allocation4_spill] sm:$0xff] %v1046_v7  ;;  %1206 = vst [vmem:[#allocation5_spill] sm:$0xff] %v1049_v13  ;;  %v494_v27 = vmul.f32 %v965_v63, %v251_v54  ;;  %v590_v28 = vmul.f32 %v967_v0, %v251_v54  ;;  %v753_v33 = vpop.f32.mrf.mxu0  ;;  %v331_v62 = vpop.f32.mrf.mxu1  ;;  %v1054_v32 = vmul.f32 %v771_v22, %v961_v59 }
  0xdb   :  { %v400_v43 = vmul.f32 %v753_v33, %v963_v60  ;;  %v497_v15 = vmul.f32 %v753_v33, %v965_v63  ;;  %v593_v16 = vmul.f32 %v753_v33, %v967_v0  ;;  %v401_v52 = vadd.f32 %v397_v48, %v389_v49 }
  0xdc   :  { %1207 = vst [vmem:[#allocation6_spill] sm:$0xff] %v1054_v32  ;;  %v498_v7 = vadd.f32 %v494_v27, %v486_v50  ;;  %v594_v13 = vadd.f32 %v590_v28, %v582_v18  ;;  %v1060_v47 = vmul.f32 %v957_v57, %v321_v44  ;;  %v261_v51 = vpop.f32.mrf.mxu0  ;;  %v1063_v53 = vmul.f32 %v959_v58, %v321_v44  ;;  %v777_v18 = vpop.f32.mrf.mxu1 }
  0xdd   :  { %v404_v23 = vadd.f32 %v400_v43, %v392_v29  ;;  %v1066_v22 = vmul.f32 %v961_v59, %v321_v44  ;;  %v399_v54 = vmul.f32 %v963_v60, %v261_v51  ;;  %v501_v32 = vadd.f32 %v497_v15, %v489_v36 }
  0xde   :  { %v597_v24 = vadd.f32 %v593_v16, %v585_v37  ;;  %v496_v33 = vmul.f32 %v965_v63, %v261_v51  ;;  %v592_v49 = vmul.f32 %v967_v0, %v261_v51  ;;  %v756_v50 = vpop.f32.mrf.mxu0  ;;  %v446_v57 = vmul.f32 %v774_v25, %v969_v1 }
  0xdf   :  { %v1073_v29 = vmul.f32 %v774_v25, %v971_v2  ;;  %v410_v58 = vmul.f32 %v756_v50, %v975_v4  ;;  %v507_v59 = vmul.f32 %v756_v50, %v977_v5  ;;  %v403_v44 = vadd.f32 %v399_v54, %v391_v56 }
  0xe0   :  { %v500_v48 = vadd.f32 %v496_v33, %v488_v61  ;;  %v639_v60 = vmul.f32 %v774_v25, %v973_v3  ;;  %v603_v36 = vmul.f32 %v756_v50, %v979_v6  ;;  %v271_v63 = vpop.f32.mrf.mxu0  ;;  %v596_v37 = vadd.f32 %v592_v49, %v584_v8  ;;  %v1085_v61 = vpop.f32.mrf.mxu1 }
  0xe1   :  { %v414_v0 = vadd.f32 %v410_v58, %v402_v55  ;;  %v511_v27 = vadd.f32 %v507_v59, %v499_v17  ;;  %v1080_v28 = vmul.f32 %v969_v1, %v331_v62  ;;  %v409_v15 = vmul.f32 %v975_v4, %v271_v63 }
  0xe2   :  { %v607_v43 = vadd.f32 %v603_v36, %v595_v35  ;;  %v506_v16 = vmul.f32 %v977_v5, %v271_v63  ;;  %v602_v51 = vmul.f32 %v979_v6, %v271_v63  ;;  %v759_v56 = vpop.f32.mrf.mxu0  ;;  %v542_v8 = vmul.f32 %v971_v2, %v331_v62 }
  0xe3   :  { %v426_v25 = vadd.f32 %v987_v19, %v414_v0  ;;  %v523_v54 = vadd.f32 %v989_v20, %v511_v27  ;;  %v638_v55 = vmul.f32 %v973_v3, %v331_v62  ;;  %v413_v17 = vadd.f32 %v409_v15, %v401_v52  ;;  %v780_v52 = vpop.f32.mrf.mxu1 }
  0xe4   :  { %v510_v33 = vadd.f32 %v506_v16, %v498_v7  ;;  %v606_v35 = vadd.f32 %v602_v51, %v594_v13  ;;  %v1092_v49 = vmul.f32 %v777_v18, %v969_v1  ;;  %v1095_v50 = vmul.f32 %v777_v18, %v971_v2  ;;  %v281_v59 = vpop.f32.mrf.mxu0 }
  0xe5   :  { %v412_v58 = vmul.f32 %v759_v56, %v975_v4  ;;  %v509_v19 = vmul.f32 %v759_v56, %v977_v5  ;;  %v605_v20 = vmul.f32 %v759_v56, %v979_v6  ;;  %v619_v36 = vadd.f32 %v991_v21, %v607_v43  ;;  %v351_v56 = vpop.f32.mrf.mxu1 }
  0xe6   :  { %v425_v62 = vadd.f32 %v993_v26, %v413_v17  ;;  %v522_v7 = vadd.f32 %v995_v30, %v510_v33  ;;  %v641_v13 = vmul.f32 %v777_v18, %v973_v3  ;;  %v618_v63 = vadd.f32 %v997_v31, %v606_v35  ;;  %v1209_v33 = vld [vmem:[#allocation3_spill] sm:$0xff] }
  0xe7   :  { %v416_v0 = vadd.f32 %v412_v58, %v404_v23  ;;  %v513_v27 = vadd.f32 %v509_v19, %v501_v32  ;;  %v609_v15 = vadd.f32 %v605_v20, %v597_v24  ;;  %v1107_v16 = vmul.f32 %v969_v1, %v1085_v61  ;;  %v783_v35 = vpop.f32.mrf.mxu1  ;;  %v1210_v20 = vld [vmem:[#allocation4_spill] sm:$0xff] }
  0xe8   :  { %v411_v51 = vmul.f32 %v975_v4, %v281_v59  ;;  %v508_v21 = vmul.f32 %v977_v5, %v281_v59  ;;  %v604_v26 = vmul.f32 %v979_v6, %v281_v59  ;;  %v438_v31 = vadd.f32 %v1021_v9, %v426_v25  ;;  %v1208_v25 = vld [vmem:[#allocation2_spill] sm:$0xff] }
  0xe9   :  { %v428_v30 = vadd.f32 %v1002_v38, %v416_v0  ;;  %v525_v18 = vadd.f32 %v1004_v39, %v513_v27  ;;  %v621_v43 = vadd.f32 %v1006_v40, %v609_v15  ;;  %v458_v1 = vmul.f32 %v780_v52, %v981_v10  ;;  %v361_v15 = vpop.f32.mrf.mxu1 }
  0xea   :  { %v415_v32 = vadd.f32 %v411_v51, %v403_v44  ;;  %v512_v24 = vadd.f32 %v508_v21, %v500_v48  ;;  %v608_v23 = vadd.f32 %v604_v26, %v596_v37  ;;  %v450_v17 = vadd.f32 %v446_v57, %v438_v31 }
  0xeb   :  { %v535_v4 = vadd.f32 %v1024_v14, %v523_v54  ;;  %v555_v5 = vmul.f32 %v780_v52, %v983_v11  ;;  %v631_v6 = vadd.f32 %v1028_v34, %v619_v36  ;;  %v651_v9 = vmul.f32 %v780_v52, %v985_v12 }
  0xec   :  { %v427_v38 = vadd.f32 %v1008_v41, %v415_v32  ;;  %v524_v39 = vadd.f32 %v1011_v45, %v512_v24  ;;  %v620_v40 = vadd.f32 %v1013_v46, %v608_v23  ;;  %v462_v44 = vadd.f32 %v458_v1, %v450_v17 }
  0xed   :  { %v547_v48 = vadd.f32 %v1073_v29, %v535_v4  ;;  %v643_v37 = vadd.f32 %v639_v60, %v631_v6  ;;  %v437_v57 = vadd.f32 %v1208_v25, %v425_v62  ;;  %v457_v14 = vmul.f32 %v981_v10, %v351_v56 }
  0xee   :  { %v534_v54 = vadd.f32 %v1039_v42, %v522_v7  ;;  %v554_v34 = vmul.f32 %v983_v11, %v351_v56  ;;  %v630_v41 = vadd.f32 %v1209_v33, %v618_v63  ;;  %467 = vst.msk [vmem:[%s1202_s3 + $0x8] sm:$0xff] %vm465_vm1, %v462_v44  ;;  %v650_v60 = vmul.f32 %v985_v12, %v351_v56 }
  0xef   :  { %v559_v45 = vadd.f32 %v555_v5, %v547_v48  ;;  %v655_v46 = vadd.f32 %v651_v9, %v643_v37  ;;  %v449_v29 = vadd.f32 %v1080_v28, %v437_v57  ;;  %v440_v42 = vadd.f32 %v1210_v20, %v428_v30  ;;  %v1211_v28 = vld [vmem:[#allocation5_spill] sm:$0xff] }
  0xf0   :  { %v546_v58 = vadd.f32 %v542_v8, %v534_v54  ;;  %v642_v19 = vadd.f32 %v638_v55, %v630_v41  ;;  %v460_v59 = vmul.f32 %v783_v35, %v981_v10  ;;  %v537_v62 = vadd.f32 %v1211_v28, %v525_v18  ;;  %v1212_v55 = vld [vmem:[#allocation6_spill] sm:$0xff] }
  0xf1   :  { %563 = vst.msk [vmem:[%s1202_s3 + $0x28] sm:$0xff] %vm465_vm1, %v559_v45  ;;  %659 = vst.msk [vmem:[%s1202_s3 + $0x48] sm:$0xff] %vm465_vm1, %v655_v46  ;;  %v461_v36 = vadd.f32 %v457_v14, %v449_v29  ;;  %v557_v8 = vmul.f32 %v783_v35, %v983_v11  ;;  %v633_v7 = vadd.f32 %v1212_v55, %v621_v43 }
  0xf2   :  { %v558_v52 = vadd.f32 %v554_v34, %v546_v58  ;;  %v654_v63 = vadd.f32 %v650_v60, %v642_v19  ;;  %v452_v0 = vadd.f32 %v1092_v49, %v440_v42  ;;  %v653_v27 = vmul.f32 %v783_v35, %v985_v12 }
  0xf3   :  { %v544_v51 = vmul.f32 %v971_v2, %v1085_v61  ;;  %466 = vst.msk [vmem:[%s1202_s3] sm:$0xff] %vm465_vm1, %v461_v36  ;;  %v549_v21 = vadd.f32 %v1095_v50, %v537_v62  ;;  %v645_v26 = vadd.f32 %v641_v13, %v633_v7  ;;  %v439_v30 = vadd.f32 %v1060_v47, %v427_v38 }
  0xf4   :  { %v640_v18 = vmul.f32 %v973_v3, %v1085_v61  ;;  %562 = vst.msk [vmem:[%s1202_s3 + $0x20] sm:$0xff] %vm465_vm1, %v558_v52  ;;  %658 = vst.msk [vmem:[%s1202_s3 + $0x40] sm:$0xff] %vm465_vm1, %v654_v63  ;;  %v464_v2 = vadd.f32 %v460_v59, %v452_v0  ;;  %v536_v49 = vadd.f32 %v1063_v53, %v524_v39 }
  0xf5   :  { %v632_v50 = vadd.f32 %v1066_v22, %v620_v40  ;;  %v561_v13 = vadd.f32 %v557_v8, %v549_v21  ;;  %v657_v47 = vadd.f32 %v653_v27, %v645_v26  ;;  %v451_v43 = vadd.f32 %v1107_v16, %v439_v30 }
  0xf6   :  { %v459_v3 = vmul.f32 %v981_v10, %v361_v15  ;;  %469 = vst.msk [vmem:[%s1202_s3 + $0x18] sm:$0xff] %vm465_vm1, %v464_v2  ;;  %v548_v61 = vadd.f32 %v544_v51, %v536_v49  ;;  %v556_v31 = vmul.f32 %v983_v11, %v361_v15  ;;  %v652_v24 = vmul.f32 %v985_v12, %v361_v15 }
  0xf7   :  { %v644_v32 = vadd.f32 %v640_v18, %v632_v50  ;;  %565 = vst.msk [vmem:[%s1202_s3 + $0x38] sm:$0xff] %vm465_vm1, %v561_v13  ;;  %661 = vst.msk [vmem:[%s1202_s3 + $0x58] sm:$0xff] %vm465_vm1, %v657_v47 }
  0xf8   :  { %v463_v10 = vadd.f32 %v459_v3, %v451_v43  ;;  %v560_v53 = vadd.f32 %v556_v31, %v548_v61 }
  0xf9   :  { %v656_v22 = vadd.f32 %v652_v24, %v644_v32 }
  0xfa   :  { %468 = vst.msk [vmem:[%s1202_s3 + $0x10] sm:$0xff] %vm465_vm1, %v463_v10  ;;  %564 = vst.msk [vmem:[%s1202_s3 + $0x30] sm:$0xff] %vm465_vm1, %v560_v53 }
  0xfb   :  { %660 = vst.msk [vmem:[%s1202_s3 + $0x50] sm:$0xff] %vm465_vm1, %v656_v22 }

</bundles_post_ra>
